<compile_context>
chip_gen: v5e
topology: v5e:2x2
jax: 0.10.0
libtpu: 0.0.40
codegen_flags: <defaults>
</compile_context>

<pallas_src>
import jax
import jax.numpy as jnp
from jax import lax
from jax.experimental import pallas as pl
from jax.experimental.pallas import tpu as pltpu

HIDDEN = 64  # fixed by the module (nn.Linear(space_n, 64))

# Budget for the double-buffered obs tile (keeps TB safe on v7x's 64 MiB VMEM
# even when space_n is large; irrelevant at small space_n).
_OBS_DOUBLE_BUFFER_BUDGET = 8 * 1024 * 1024


def _round_up(n, m):
    return ((n + m - 1) // m) * m


def _make_kernel(use_bf16_tanh):
    def duel_dq_kernel(obs_ref, w1t_ref, b1t_ref, w2t_ref, b2t_ref, out_ref):
        # hidden^T: (H, TB) = w1^T @ obs^T — contraction over the feature axis.
        # (A @ B^T form; obs keeps its (TB, S) HBM layout.)
        h = lax.dot_general(
            w1t_ref[...], obs_ref[...],
            dimension_numbers=(((1,), (1,)), ((), ())),
            preferred_element_type=jnp.float32,
        ) + b1t_ref[...]                       # (H, 1) lane-broadcast bias add
        if use_bf16_tanh:
            # v6e/v7x only: bf16 EUP tanh ~2x throughput; MXU eats bf16 natively.
            x = jnp.tanh(h.astype(jnp.bfloat16))
            w2 = w2t_ref[...].astype(jnp.bfloat16)
        else:
            x = jnp.tanh(h)
            w2 = w2t_ref[...]
        # Fused dueling head (value head + mean-subtraction pre-folded into
        # w2t/b2t): (A, TB) = (A, H) @ (H, TB) — standard contraction,
        # lane-dense output store.
        out_ref[...] = (
            jnp.dot(w2, x, preferred_element_type=jnp.float32) + b2t_ref[...]
        )

    return duel_dq_kernel


def _choose_tb(batch, s_pad, block_batch):
    # Cap the batch tile so 2 (double-buffer) * TB * S_pad * 4B stays small.
    cap = (_OBS_DOUBLE_BUFFER_BUDGET // (2 * 4 * s_pad)) // 256 * 256
    tb = min(block_batch, max(256, cap))
    if batch <= tb:
        return batch        # single full-dim tile: no batch padding at all
    return tb


def _bf16_eup_ok():
    try:
        kind = jax.devices()[0].device_kind.lower()
    except Exception:
        return False
    # v5e and older have no bf16 EUP/VPU path — keep f32 there.
    return not any(v in kind for v in ("v2", "v3", "v4", "v5"))


def duel_dq_forward(obs, params, *, block_batch=2048, use_bf16_tanh=None,
                    transpose_output=True):
    """obs: (B, S) f32; params = fold_params(...).
    Returns (B, A) f32 (or the lane-dense (A, B) result if transpose_output=False)."""
    w1t, b1t, w2t, b2t = params
    B, S = obs.shape
    H, S_pad = w1t.shape
    A = w2t.shape[0]

    # Align the contraction (feature) axis to a sublane multiple; zero padding
    # is numerically exact.  No-op when space_n % 8 == 0 (as in the demo).
    if S_pad != S:
        obs = jnp.pad(obs, ((0, 0), (0, S_pad - S)))

    TB = _choose_tb(B, S_pad, block_batch)
    grid_n = pl.cdiv(B, TB)

    if use_bf16_tanh is None:
        # The EUP tanh only rivals HBM traffic at large batch; keep f32 otherwise.
        use_bf16_tanh = (B * H >= (1 << 20)) and _bf16_eup_ok()

    # v7x: genuinely shard an even multi-tile batch grid across both TensorCores.
    if grid_n >= 2 and grid_n % 2 == 0:
        dim_sem = getattr(pltpu, "CORE_PARALLEL", "parallel")
    else:
        dim_sem = "parallel"

    flops = 2 * B * S_pad * H + 2 * B * H * A
    bytes_accessed = 4 * (B * S_pad + B * A) + 4 * int(
        w1t.size + b1t.size + w2t.size + b2t.size)

    out_t = pl.pallas_call(
        _make_kernel(use_bf16_tanh),
        out_shape=jax.ShapeDtypeStruct((A, B), jnp.float32),
        grid_spec=pltpu.PrefetchScalarGridSpec(
            num_scalar_prefetch=0,
            grid=(grid_n,),
            in_specs=[
                pl.BlockSpec((TB, S_pad), lambda i: (i, 0)),   # batch tile
                pl.BlockSpec(w1t.shape, lambda i: (0, 0)),     # weights resident
                pl.BlockSpec(b1t.shape, lambda i: (0, 0)),
                pl.BlockSpec(w2t.shape, lambda i: (0, 0)),
                pl.BlockSpec(b2t.shape, lambda i: (0, 0)),
            ],
            out_specs=pl.BlockSpec((A, TB), lambda i: (0, i)),  # lane-dense out
        ),
        compiler_params=pltpu.CompilerParams(
            dimension_semantics=(dim_sem,),
        ),
        cost_estimate=pl.CostEstimate(
            flops=int(flops),
            transcendentals=int(B * H),
            bytes_accessed=int(bytes_accessed),
        ),
    )(obs, w1t, b1t, w2t, b2t)

    # Callers that can consume the lane-dense (A, B) layout directly should pass
    # transpose_output=False; the tiny .T is only for PyTorch (B, A) parity.
    return out_t.T if transpose_output else out_t


def init_params(key, space_n, hidden, action_n):
    """Deterministic init mirroring PyTorch Linear default: U(-1/sqrt(fan_in), +)."""
    keys = jax.random.split(key, 6)

    def linear(kw, kb, fan_in, fan_out):
        bound = 1.0 / jnp.sqrt(float(fan_in))
        # stored as (in, out): transpose of PyTorch's (out, in) weight
        w = jax.random.uniform(kw, (fan_in, fan_out), jnp.float32, -bound, bound)
        b = jax.random.uniform(kb, (1, fan_out), jnp.float32, -bound, bound)
        return w, b

    w1, b1 = linear(keys[0], keys[1], space_n, hidden)
    w2a, b2a = linear(keys[2], keys[3], hidden, action_n)
    w2q, b2q = linear(keys[4], keys[5], hidden, 1)
    return w1, b1, w2a, b2a, w2q, b2q


def fold_params(w1, b1, w2a, b2a, w2q, b2q):
    """Fold the dueling value head + mean-subtraction into the advantage weights
    (exact) and lay the parameters out transposed for the lane-dense kernel."""
    S = w1.shape[0]
    S_pad = _round_up(max(S, 1), 8)
    w2 = w2a + (w2q - jnp.mean(w2a, axis=1, keepdims=True))   # (64, A)
    b2 = b2a + (b2q - jnp.mean(b2a))                          # (1, A)
    if S_pad != S:
        w1 = jnp.pad(w1, ((0, S_pad - S), (0, 0)))            # zero K-pad: exact
    w1t = w1.T                                                # (64, S_pad)
    b1t = b1.T                                                # (64, 1)
    w2t = w2.T                                                # (A, 64)
    b2t = b2.T                                                # (A, 1)
    return w1t, b1t, w2t, b2t


def reference_forward(obs, w1, b1, w2a, b2a, w2q, b2q):
    """Plain-JAX reference mirroring the PyTorch forward exactly (unfolded)."""
    x = jnp.tanh(obs @ w1 + b1)
    xa = x @ w2a + b2a
    xv = x @ w2q + b2q
    xv = xv - jnp.mean(xa, axis=1, keepdims=True)
    return xa + xv


if __name__ == "__main__":
    space_n = 8      # observation dimension
    action_n = 4     # number of actions
    batch = 2

    key = jax.random.PRNGKey(0)
    k_obs, k_params = jax.random.split(key)

    obs = jax.random.normal(k_obs, (batch, space_n), dtype=jnp.float32)
    raw_params = init_params(k_params, space_n, HIDDEN, action_n)
    params = fold_params(*raw_params)

    out = duel_dq_forward(obs, params)
    out = jax.block_until_ready(out)

    ref = reference_forward(obs, *raw_params)
    assert out.shape == (batch, action_n)
    assert jnp.allclose(out, ref, atol=1e-5, rtol=1e-5), "mismatch vs reference"

    print("KERNEL_OK")
</pallas_src>

<mosaic_0001>
module attributes {stable_mosaic.version = 11 : i64} {
  func.func @duel_dq_kernel(%arg0: i32, %arg1: memref<2x8xf32, #tpu.memory_space<vmem>>, %arg2: memref<64x8xf32, #tpu.memory_space<vmem>>, %arg3: memref<64x1xf32, #tpu.memory_space<vmem>>, %arg4: memref<4x64xf32, #tpu.memory_space<vmem>>, %arg5: memref<4x1xf32, #tpu.memory_space<vmem>>, %arg6: memref<4x2xf32, #tpu.memory_space<vmem>>) attributes {dimension_semantics = [#tpu.dimension_semantics<parallel>], iteration_bounds = array<i64: 1>, scalar_prefetch = 0 : i64, scratch_operands = 0 : i64, tpu.core_type = #tpu.core_type<tc>, window_params = [{transform_indices = @transform_0, window_bounds = array<i64: 2, 8>}, {pipeline_mode = #tpu.pipeline_mode<synchronous>, transform_indices = @transform_1, window_bounds = array<i64: 64, 8>}, {pipeline_mode = #tpu.pipeline_mode<synchronous>, transform_indices = @transform_2, window_bounds = array<i64: 64, 1>}, {pipeline_mode = #tpu.pipeline_mode<synchronous>, transform_indices = @transform_3, window_bounds = array<i64: 4, 64>}, {pipeline_mode = #tpu.pipeline_mode<synchronous>, transform_indices = @transform_4, window_bounds = array<i64: 4, 1>}, {transform_indices = @transform_5, window_bounds = array<i64: 4, 2>}]} {
    %c0 = arith.constant 0 : index
    %c0_0 = arith.constant 0 : index
    %0 = vector.load %arg2[%c0, %c0_0] : memref<64x8xf32, #tpu.memory_space<vmem>>, vector<64x8xf32>
    %c0_1 = arith.constant 0 : index
    %c0_2 = arith.constant 0 : index
    %1 = vector.load %arg1[%c0_1, %c0_2] : memref<2x8xf32, #tpu.memory_space<vmem>>, vector<2x8xf32>
    %cst = arith.constant dense<0.000000e+00> : vector<64x2xf32>
    %2 = tpu.matmul %0, %1, %cst {dimension_numbers = #tpu.dot_dimension_numbers<[1], [1], [0], [0], [0, 0, 1, 0], [], []>} : vector<64x8xf32>, vector<2x8xf32>, vector<64x2xf32> -> vector<64x2xf32>
    %c0_3 = arith.constant 0 : index
    %c0_4 = arith.constant 0 : index
    %3 = vector.load %arg3[%c0_3, %c0_4] : memref<64x1xf32, #tpu.memory_space<vmem>>, vector<64x1xf32>
    %4 = vector.broadcast %3 : vector<64x1xf32> to vector<64x2xf32>
    %5 = arith.addf %2, %4 : vector<64x2xf32>
    %6 = math.tanh %5 : vector<64x2xf32>
    %c0_5 = arith.constant 0 : index
    %c0_6 = arith.constant 0 : index
    %7 = vector.load %arg4[%c0_5, %c0_6] : memref<4x64xf32, #tpu.memory_space<vmem>>, vector<4x64xf32>
    %cst_7 = arith.constant dense<0.000000e+00> : vector<4x2xf32>
    %8 = tpu.matmul %7, %6, %cst_7 {dimension_numbers = #tpu.dot_dimension_numbers<[1], [0], [0], [1], [0, 0, 1, 1], [], []>} : vector<4x64xf32>, vector<64x2xf32>, vector<4x2xf32> -> vector<4x2xf32>
    %c0_8 = arith.constant 0 : index
    %c0_9 = arith.constant 0 : index
    %9 = vector.load %arg5[%c0_8, %c0_9] : memref<4x1xf32, #tpu.memory_space<vmem>>, vector<4x1xf32>
    %10 = vector.broadcast %9 : vector<4x1xf32> to vector<4x2xf32>
    %11 = arith.addf %8, %10 : vector<4x2xf32>
    %c0_10 = arith.constant 0 : index
    %c0_11 = arith.constant 0 : index
    %12 = vector.load %arg6[%c0_10, %c0_11] : memref<4x2xf32, #tpu.memory_space<vmem>>, vector<4x2xf32>
    tpu.vector_store %arg6[%c0_10, %c0_11], %11 {strides = array<i32>} : memref<4x2xf32, #tpu.memory_space<vmem>>, vector<4x2xf32>,
    return
  }
  func.func @transform_0(%arg0: i32) -> (i32, i32) {
    %c0_i32 = arith.constant 0 : i32
    %c0_i32_0 = arith.constant 0 : i32
    return %arg0, %c0_i32 : i32, i32
  }
  func.func @transform_1(%arg0: i32) -> (i32, i32) {
    %c0_i32 = arith.constant 0 : i32
    %c0_i32_0 = arith.constant 0 : i32
    %c0_i32_1 = arith.constant 0 : i32
    return %c0_i32, %c0_i32_0 : i32, i32
  }
  func.func @transform_2(%arg0: i32) -> (i32, i32) {
    %c0_i32 = arith.constant 0 : i32
    %c0_i32_0 = arith.constant 0 : i32
    %c0_i32_1 = arith.constant 0 : i32
    return %c0_i32, %c0_i32_0 : i32, i32
  }
  func.func @transform_3(%arg0: i32) -> (i32, i32) {
    %c0_i32 = arith.constant 0 : i32
    %c0_i32_0 = arith.constant 0 : i32
    %c0_i32_1 = arith.constant 0 : i32
    return %c0_i32, %c0_i32_0 : i32, i32
  }
  func.func @transform_4(%arg0: i32) -> (i32, i32) {
    %c0_i32 = arith.constant 0 : i32
    %c0_i32_0 = arith.constant 0 : i32
    %c0_i32_1 = arith.constant 0 : i32
    return %c0_i32, %c0_i32_0 : i32, i32
  }
  func.func @transform_5(%arg0: i32) -> (i32, i32) {
    %c0_i32 = arith.constant 0 : i32
    %c0_i32_0 = arith.constant 0 : i32
    return %c0_i32, %arg0 : i32, i32
  }
}

</mosaic_0001>

<bundles_post_ra>
// kernel: tpu_custom_call.1
= control target key start
LH: loop header
LB: loop body
LE: loop exit
PB: predicated region body
PF: predicated region fallthrough
CT: control target
= control target key end

     0   :  { %vm77_vm0 = vcmask 64512   ;;  %v223_v2 = vmov 0   ;;  %vm161_vm1 = vcmask 523264   ;;  %vm185_vm2 = vcmask 11264   ;;  %s325_s0 = inlined_call_operand.vmem [shape: f32[2,8], index: 0, kind: input, shape index: {}]   ;;  %s326_s1 = inlined_call_operand.vmem [shape: f32[64,8], index: 1, kind: input, shape index: {}]   ;;  %s327_s2 = inlined_call_operand.vmem [shape: f32[64,1], index: 2, kind: input, shape index: {}]   ;;  %s328_s4 = inlined_call_operand.vmem [shape: f32[4,1], index: 4, kind: input, shape index: {}]   ;;  %s329_s3 = inlined_call_operand.vmem [shape: f32[4,64], index: 3, kind: input, shape index: {}]   ;;  %s330_s5 = inlined_call_operand.vmem [shape: f32[4,2], index: 5, kind: output, shape index: {}]  }
   0x1   :  { %v28_v0 = vld [vmem:[%s325_s0] sm:$0x3]  ;;  %v23_v1 = vld [vmem:[%s326_s1 + $0x18] sm:$0xff]  ;;  %205 = vset.pattern.permute.xlu1 %v223_v2  ;;  %204 = vset.pattern.permute.xlu0 %v223_v2  ;;  %v26_v3 = vld [vmem:[%s326_s1 + $0x30] sm:$0xff] }
   0x2   :  { %201 = vmatpush.xpose.msk.msra.mxu2 %vm77_vm0, %v28_v0  ;;  %202 = vmatpush.xpose.msk.msra.mxu3 %vm77_vm0, %v28_v0  ;;  %v36_v4 = vld [vmem:[%s327_s2 + $0x38] sm:$0xff]  ;;  %v34_v5 = vld [vmem:[%s327_s2 + $0x28] sm:$0xff]  ;;  %v20_v6 = vld [vmem:[%s326_s1] sm:$0xff] }
   0x3   :  { %191 = vmatpush.xpose.msk.msra.mxu0 %vm77_vm0, %v28_v0  ;;  %74 = vperm.xlu0 %204, %v36_v4   ;;  %v32_v7 = vld [vmem:[%s327_s2 + $0x18] sm:$0xff]  ;;  %v35_v8 = vld [vmem:[%s327_s2 + $0x30] sm:$0xff]  ;;  %v33_v9 = vld [vmem:[%s327_s2 + $0x20] sm:$0xff] }
   0x4   :  { %64 = vperm.xlu1 %205, %v34_v5   ;;  %206 = vset.pattern.permute.xlu2 %v223_v2  ;;  %v24_v10 = vld [vmem:[%s326_s1 + $0x20] sm:$0xff]  ;;  %v27_v11 = vld [vmem:[%s326_s1 + $0x38] sm:$0xff]  ;;  %v21_v12 = vld [vmem:[%s326_s1 + $0x8] sm:$0xff] }
   0x5   :  { %195 = vmatmul.msk.f32.vlgmr.msra.gmra.mxu2 %vm77_vm0, %v23_v1  ;;  %198 = vmatmul.msk.f32.vlgmr.msra.gmra.mxu3 %vm77_vm0, %v26_v3  ;;  %v31_v13 = vld [vmem:[%s327_s2 + $0x10] sm:$0xff]  ;;  %v30_v14 = vld [vmem:[%s327_s2 + $0x8] sm:$0xff]  ;;  %v29_v15 = vld [vmem:[%s327_s2] sm:$0xff] }
   0x6   :  { %192 = vmatmul.msk.f32.vlgmr.msra.gmra.mxu0 %vm77_vm0, %v20_v6  ;;  %54 = vperm.xlu2 %206, %v32_v7   ;;  %v25_v16 = vld [vmem:[%s326_s1 + $0x28] sm:$0xff]  ;;  %v22_v17 = vld [vmem:[%s326_s1 + $0x10] sm:$0xff]  ;;  %v155_v18 = vld [vmem:[%s328_s4] sm:$0xf] }
   0x7   :  { %v154_v50 = vld [vmem:[%s329_s3] sm:$0xf] }
   0xb   :  { %69 = vperm.xlu0 %204, %v35_v8  }
   0xc   :  { %59 = vperm.xlu1 %205, %v33_v9  }
   0xd   :  { %196 = vmatmul.msk.f32.gmra.mxu2 %vm77_vm0, %v24_v10  ;;  %199 = vmatmul.msk.f32.gmra.mxu3 %vm77_vm0, %v27_v11 }
   0xe   :  { %193 = vmatmul.msk.f32.gmra.mxu0 %vm77_vm0, %v21_v12  ;;  %49 = vperm.xlu2 %206, %v31_v13  }
  0x13   :  { %44 = vperm.xlu0 %204, %v30_v14  }
  0x14   :  { %39 = vperm.xlu1 %205, %v29_v15  }
  0x15   :  { %197 = vmatmul.msk.f32.gmra.mxu2 %vm77_vm0, %v25_v16 }
  0x16   :  { %194 = vmatmul.msk.f32.gmra.mxu0 %vm77_vm0, %v22_v17  ;;  %158 = vperm.xlu2 %206, %v155_v18  }
  0x60   :  { %v55_v29 = vpop.permute.xlu2 %54 }
  0x68   :  { %v50_v39 = vpop.permute.xlu2 %49 }
  0x70   :  { %v159_v52 = vpop.permute.xlu2 %158 }
  0x75   :  { %v75_v20 = vpop.permute.xlu0 %74 }
  0x76   :  { %v65_v23 = vpop.permute.xlu1 %64 }
  0x7d   :  { %v70_v27 = vpop.permute.xlu0 %69 }
  0x7e   :  { %v60_v31 = vpop.permute.xlu1 %59 }
  0x83   :  { %v122_v19 = vpop.f32.mrf.mxu0 }
  0x85   :  { %v45_v40 = vpop.permute.xlu0 %44 }
  0x86   :  { %v40_v42 = vpop.permute.xlu1 %39 }
  0x87   :  { %v123_v45 = vadd.f32 %v122_v19, %v40_v42 }
  0x88   :  { %v131_v21 = vpop.f32.mrf.mxu2  ;;  %v140_v22 = vpop.f32.mrf.mxu3 }
  0x89   :  { %v141_v30 = vadd.f32 %v140_v22, %v70_v27  ;;  %v132_v37 = vadd.f32 %v131_v21, %v55_v29 }
  0x8b   :  { %v125_v24 = vpop.f32.mrf.mxu0 }
  0x8c   :  { %v126_v43 = vadd.f32 %v125_v24, %v45_v40 }
  0x90   :  { %v134_v25 = vpop.f32.mrf.mxu2  ;;  %v143_v26 = vpop.f32.mrf.mxu3 }
  0x91   :  { %v144_v28 = vadd.f32 %v143_v26, %v75_v20  ;;  %v135_v33 = vadd.f32 %v134_v25, %v60_v31 }
  0x93   :  { %207 = vtanh.f32 %v144_v28  ;;  %v128_v36 = vpop.f32.mrf.mxu0 }
  0x94   :  { %209 = vtanh.f32 %v141_v30  ;;  %v129_v41 = vadd.f32 %v128_v36, %v50_v39 }
  0x98   :  { %v137_v32 = vpop.f32.mrf.mxu2 }
  0x99   :  { %v138_v34 = vadd.f32 %v137_v32, %v65_v23  ;;  %v208_v35 = vpop.eup %207 }
  0x9a   :  { %173 = vmatpush.msra.mxu1 %v208_v35  ;;  %v210_v38 = vpop.eup %209 }
  0x9b   :  { %211 = vtanh.f32 %v138_v34 }
  0x9c   :  { %213 = vtanh.f32 %v135_v33  ;;  %174 = vmatpush.msra.mxu1 %v210_v38 }
  0x9d   :  { %215 = vtanh.f32 %v132_v37 }
  0x9e   :  { %217 = vtanh.f32 %v129_v41 }
  0x9f   :  { %219 = vtanh.f32 %v126_v43 }
  0xa0   :  { %221 = vtanh.f32 %v123_v45 }
  0xa1   :  { %v212_v44 = vpop.eup %211 }
  0xa2   :  { %175 = vmatpush.msra.mxu1 %v212_v44  ;;  %v214_v46 = vpop.eup %213 }
  0xa3   :  { %v216_v47 = vpop.eup %215 }
  0xa4   :  { %176 = vmatpush.msra.mxu1 %v214_v46  ;;  %v218_v48 = vpop.eup %217 }
  0xa5   :  { %v220_v49 = vpop.eup %219 }
  0xa6   :  { %177 = vmatpush.msra.mxu1 %v216_v47  ;;  %v222_v51 = vpop.eup %221 }
  0xa8   :  { %178 = vmatpush.msra.mxu1 %v218_v48 }
  0xaa   :  { %179 = vmatpush.msra.mxu1 %v220_v49 }
  0xac   :  { %180 = vmatpush.msra.mxu1 %v222_v51 }
  0xad   :  { %200 = vmatmul.msk.f32.vlgmr.msra.gmra.mxu1 %vm161_vm1, %v154_v50 }
 0x12a   :  { %v182_v53 = vpop.f32.mrf.mxu1 }
 0x12b   :  { %v183_v54 = vadd.f32 %v182_v53, %v159_v52 }
 0x12d   :  { %186 = vst.msk [vmem:[%s330_s5] sm:$0xf] %vm185_vm2, %v183_v54 }

</bundles_post_ra>
